<compile_context>
chip_gen: v6e
topology: v6e:2x2x1
jax: 0.10.0
libtpu: 0.0.40
codegen_flags: <defaults>
</compile_context>

<pallas_src>
import functools

import jax
import jax.numpy as jnp
from jax.experimental import pallas as pl
from jax.experimental.pallas import tpu as pltpu

BN_EPS = 1e-5
LANE = 128


def _round_up(n, m):
    return ((n + m - 1) // m) * m


def _fused_mlp_kernel(*refs, d_in_pad, d_out):
    """refs = (x_ref, w0_ref, b0_ref, w1_ref, b1_ref, ..., out_ref).

    x_ref is the UNPADDED (B, d_in) input; w refs are pre-transposed
    (d_in_pad, d_out_pad); b refs are (1, d_out_pad); out_ref is the true
    (B, d_out) output.
    """
    x_ref = refs[0]
    o_ref = refs[-1]
    wb_refs = refs[1:-1]
    n_layers = len(wb_refs) // 2

    B, d_in = x_ref.shape
    h = x_ref[...].astype(jnp.float32)                       # (B, d_in)
    if d_in_pad > d_in:
        # In-kernel lane pad: padded weight rows are zero, so this never changes
        # real-channel results.
        h = jnp.concatenate(
            [h, jnp.zeros((B, d_in_pad - d_in), jnp.float32)], axis=-1)

    for li in range(n_layers):
        # Linear: feed the MXU straight from the ref (short weight live range),
        # pre-transposed weights, f32 accumulation.
        z = (jnp.dot(h, wb_refs[2 * li][...],
                     preferred_element_type=jnp.float32)
             + wb_refs[2 * li + 1][...])

        # Sigmoid via a single EUP tanh: sigmoid(z) = 0.5*tanh(0.5*z) + 0.5.
        s = 0.5 * jnp.tanh(0.5 * z) + 0.5

        # BatchNorm1d, training mode, affine=False: batch statistics, biased
        # variance, eps=1e-5.
        mean = jnp.mean(s, axis=0, keepdims=True)
        centered = s - mean
        var = jnp.mean(centered * centered, axis=0, keepdims=True)
        h = centered * jax.lax.rsqrt(var + BN_EPS)

    # Direct masked store of the true output width (no external slice op).
    o_ref[...] = h[:, :d_out].astype(o_ref.dtype)


def init_mlp_params(key, layer_sizes, input_size):
    """Deterministic parameter init mirroring nn.Linear shapes (w: (d_out, d_in))."""
    sizes = [input_size] + list(layer_sizes)
    params = []
    for l_id in range(len(sizes) - 1):
        d_in, d_out = sizes[l_id], sizes[l_id + 1]
        key, kw, kb = jax.random.split(key, 3)
        bound = 1.0 / jnp.sqrt(d_in)
        w = jax.random.uniform(kw, (d_out, d_in), jnp.float32, -bound, bound)
        b = jax.random.uniform(kb, (d_out,), jnp.float32, -bound, bound)
        params.append((w, b))
    return params


def prepare_params(params):
    """One-time wrapper-side prep: transpose weights to (d_in, d_out) and zero-pad
    both feature dims up to multiples of 128 lanes."""
    prepped = []
    for w, b in params:
        d_out, d_in = w.shape
        d_in_p = _round_up(d_in, LANE)
        d_out_p = _round_up(d_out, LANE)
        w_t = jnp.zeros((d_in_p, d_out_p), jnp.float32).at[:d_in, :d_out].set(w.T)
        b_p = jnp.zeros((1, d_out_p), jnp.float32).at[:, :d_out].set(b)
        prepped.append((w_t, b_p))
    return tuple(prepped)


@functools.partial(jax.jit, static_argnames=("d_out",))
def mlp_net_forward(x, prepped_params, d_out):
    B = x.shape[0]
    d_in_p = prepped_params[0][0].shape[0]

    args = [x]
    flops = 0
    transcendentals = 0
    bytes_accessed = 4 * (x.size + B * d_out)
    for w_t, b_p in prepped_params:
        args.append(w_t)
        args.append(b_p)
        flops += 2 * B * w_t.shape[0] * w_t.shape[1]
        transcendentals += B * w_t.shape[1]
        bytes_accessed += 4 * (w_t.size + b_p.size)

    kernel = functools.partial(_fused_mlp_kernel, d_in_pad=d_in_p, d_out=d_out)

    out = pl.pallas_call(
        kernel,
        out_shape=jax.ShapeDtypeStruct((B, d_out), jnp.float32),
        in_specs=[pl.BlockSpec(memory_space=pltpu.MemorySpace.VMEM)] * len(args),
        out_specs=pl.BlockSpec(memory_space=pltpu.MemorySpace.VMEM),
        cost_estimate=pl.CostEstimate(
            flops=flops,
            transcendentals=transcendentals,
            bytes_accessed=bytes_accessed,
        ),
    )(*args)

    return out


if __name__ == "__main__":
    key = jax.random.PRNGKey(0)
    key, kx = jax.random.split(key)

    batch = 8
    input_size = 32
    layer_sizes = [64, 32, 16]

    x = jax.random.normal(kx, (batch, input_size), jnp.float32)
    params = init_mlp_params(key, layer_sizes, input_size)
    prepped = prepare_params(params)

    out = mlp_net_forward(x, prepped, layer_sizes[-1])
    out = jax.block_until_ready(out)

    assert out.shape == (batch, layer_sizes[-1]), out.shape
    assert bool(jnp.all(jnp.isfinite(out)))
    print("KERNEL_OK")
</pallas_src>

<mosaic_0001>
module attributes {stable_mosaic.version = 11 : i64} {
  func.func @_fused_mlp_kernel(%arg0: memref<8x32xf32, #tpu.memory_space<vmem>>, %arg1: memref<128x128xf32, #tpu.memory_space<vmem>>, %arg2: memref<1x128xf32, #tpu.memory_space<vmem>>, %arg3: memref<128x128xf32, #tpu.memory_space<vmem>>, %arg4: memref<1x128xf32, #tpu.memory_space<vmem>>, %arg5: memref<128x128xf32, #tpu.memory_space<vmem>>, %arg6: memref<1x128xf32, #tpu.memory_space<vmem>>, %arg7: memref<8x16xf32, #tpu.memory_space<vmem>>) attributes {dimension_semantics = [], scalar_prefetch = 0 : i64, scratch_operands = 0 : i64, tpu.core_type = #tpu.core_type<tc>} {
    %c0 = arith.constant 0 : index
    %c0_0 = arith.constant 0 : index
    %0 = vector.load %arg0[%c0, %c0_0] : memref<8x32xf32, #tpu.memory_space<vmem>>, vector<8x32xf32>
    %cst = arith.constant 0.000000e+00 : f32
    %1 = vector.broadcast %cst : f32 to vector<8x96xf32>
    %2 = tpu.concatenate %0, %1 in 1 : vector<8x32xf32>, vector<8x96xf32> -> vector<8x128xf32>
    %c0_1 = arith.constant 0 : index
    %c0_2 = arith.constant 0 : index
    %3 = vector.load %arg1[%c0_1, %c0_2] : memref<128x128xf32, #tpu.memory_space<vmem>>, vector<128x128xf32>
    %cst_3 = arith.constant dense<0.000000e+00> : vector<8x128xf32>
    %4 = tpu.matmul %2, %3, %cst_3 {dimension_numbers = #tpu.dot_dimension_numbers<[1], [0], [0], [1], [0, 0, 1, 1], [], []>} : vector<8x128xf32>, vector<128x128xf32>, vector<8x128xf32> -> vector<8x128xf32>
    %c0_4 = arith.constant 0 : index
    %c0_5 = arith.constant 0 : index
    %5 = vector.load %arg2[%c0_4, %c0_5] : memref<1x128xf32, #tpu.memory_space<vmem>>, vector<1x128xf32>
    %6 = vector.broadcast %5 : vector<1x128xf32> to vector<8x128xf32>
    %7 = arith.addf %4, %6 : vector<8x128xf32>
    %cst_6 = arith.constant 5.000000e-01 : f32
    %8 = vector.broadcast %cst_6 : f32 to vector<8x128xf32>
    %9 = arith.mulf %8, %7 : vector<8x128xf32>
    %10 = math.tanh %9 : vector<8x128xf32>
    %cst_7 = arith.constant 5.000000e-01 : f32
    %11 = vector.broadcast %cst_7 : f32 to vector<8x128xf32>
    %12 = arith.mulf %11, %10 : vector<8x128xf32>
    %cst_8 = arith.constant 5.000000e-01 : f32
    %13 = vector.broadcast %cst_8 : f32 to vector<8x128xf32>
    %14 = arith.addf %12, %13 : vector<8x128xf32>
    %cst_9 = arith.constant dense<0.000000e+00> : vector<128xf32>
    %15 = vector.multi_reduction <add>, %14, %cst_9 [0] : vector<8x128xf32> to vector<128xf32>
    %16 = vector.shape_cast %15 : vector<128xf32> to vector<1x128xf32>
    %cst_10 = arith.constant 8.000000e+00 : f32
    %17 = vector.broadcast %cst_10 : f32 to vector<1x128xf32>
    %18 = arith.divf %16, %17 : vector<1x128xf32>
    %19 = vector.broadcast %18 : vector<1x128xf32> to vector<8x128xf32>
    %20 = arith.subf %14, %19 : vector<8x128xf32>
    %21 = arith.mulf %20, %20 : vector<8x128xf32>
    %cst_11 = arith.constant dense<0.000000e+00> : vector<128xf32>
    %22 = vector.multi_reduction <add>, %21, %cst_11 [0] : vector<8x128xf32> to vector<128xf32>
    %23 = vector.shape_cast %22 : vector<128xf32> to vector<1x128xf32>
    %cst_12 = arith.constant 8.000000e+00 : f32
    %24 = vector.broadcast %cst_12 : f32 to vector<1x128xf32>
    %25 = arith.divf %23, %24 : vector<1x128xf32>
    %cst_13 = arith.constant 9.99999974E-6 : f32
    %26 = vector.broadcast %cst_13 : f32 to vector<1x128xf32>
    %27 = arith.addf %25, %26 : vector<1x128xf32>
    %28 = math.rsqrt %27 : vector<1x128xf32>
    %29 = vector.broadcast %28 : vector<1x128xf32> to vector<8x128xf32>
    %30 = arith.mulf %20, %29 : vector<8x128xf32>
    %c0_14 = arith.constant 0 : index
    %c0_15 = arith.constant 0 : index
    %31 = vector.load %arg3[%c0_14, %c0_15] : memref<128x128xf32, #tpu.memory_space<vmem>>, vector<128x128xf32>
    %cst_16 = arith.constant dense<0.000000e+00> : vector<8x128xf32>
    %32 = tpu.matmul %30, %31, %cst_16 {dimension_numbers = #tpu.dot_dimension_numbers<[1], [0], [0], [1], [0, 0, 1, 1], [], []>} : vector<8x128xf32>, vector<128x128xf32>, vector<8x128xf32> -> vector<8x128xf32>
    %c0_17 = arith.constant 0 : index
    %c0_18 = arith.constant 0 : index
    %33 = vector.load %arg4[%c0_17, %c0_18] : memref<1x128xf32, #tpu.memory_space<vmem>>, vector<1x128xf32>
    %34 = vector.broadcast %33 : vector<1x128xf32> to vector<8x128xf32>
    %35 = arith.addf %32, %34 : vector<8x128xf32>
    %cst_19 = arith.constant 5.000000e-01 : f32
    %36 = vector.broadcast %cst_19 : f32 to vector<8x128xf32>
    %37 = arith.mulf %36, %35 : vector<8x128xf32>
    %38 = math.tanh %37 : vector<8x128xf32>
    %cst_20 = arith.constant 5.000000e-01 : f32
    %39 = vector.broadcast %cst_20 : f32 to vector<8x128xf32>
    %40 = arith.mulf %39, %38 : vector<8x128xf32>
    %cst_21 = arith.constant 5.000000e-01 : f32
    %41 = vector.broadcast %cst_21 : f32 to vector<8x128xf32>
    %42 = arith.addf %40, %41 : vector<8x128xf32>
    %cst_22 = arith.constant dense<0.000000e+00> : vector<128xf32>
    %43 = vector.multi_reduction <add>, %42, %cst_22 [0] : vector<8x128xf32> to vector<128xf32>
    %44 = vector.shape_cast %43 : vector<128xf32> to vector<1x128xf32>
    %cst_23 = arith.constant 8.000000e+00 : f32
    %45 = vector.broadcast %cst_23 : f32 to vector<1x128xf32>
    %46 = arith.divf %44, %45 : vector<1x128xf32>
    %47 = vector.broadcast %46 : vector<1x128xf32> to vector<8x128xf32>
    %48 = arith.subf %42, %47 : vector<8x128xf32>
    %49 = arith.mulf %48, %48 : vector<8x128xf32>
    %cst_24 = arith.constant dense<0.000000e+00> : vector<128xf32>
    %50 = vector.multi_reduction <add>, %49, %cst_24 [0] : vector<8x128xf32> to vector<128xf32>
    %51 = vector.shape_cast %50 : vector<128xf32> to vector<1x128xf32>
    %cst_25 = arith.constant 8.000000e+00 : f32
    %52 = vector.broadcast %cst_25 : f32 to vector<1x128xf32>
    %53 = arith.divf %51, %52 : vector<1x128xf32>
    %cst_26 = arith.constant 9.99999974E-6 : f32
    %54 = vector.broadcast %cst_26 : f32 to vector<1x128xf32>
    %55 = arith.addf %53, %54 : vector<1x128xf32>
    %56 = math.rsqrt %55 : vector<1x128xf32>
    %57 = vector.broadcast %56 : vector<1x128xf32> to vector<8x128xf32>
    %58 = arith.mulf %48, %57 : vector<8x128xf32>
    %c0_27 = arith.constant 0 : index
    %c0_28 = arith.constant 0 : index
    %59 = vector.load %arg5[%c0_27, %c0_28] : memref<128x128xf32, #tpu.memory_space<vmem>>, vector<128x128xf32>
    %cst_29 = arith.constant dense<0.000000e+00> : vector<8x128xf32>
    %60 = tpu.matmul %58, %59, %cst_29 {dimension_numbers = #tpu.dot_dimension_numbers<[1], [0], [0], [1], [0, 0, 1, 1], [], []>} : vector<8x128xf32>, vector<128x128xf32>, vector<8x128xf32> -> vector<8x128xf32>
    %c0_30 = arith.constant 0 : index
    %c0_31 = arith.constant 0 : index
    %61 = vector.load %arg6[%c0_30, %c0_31] : memref<1x128xf32, #tpu.memory_space<vmem>>, vector<1x128xf32>
    %62 = vector.broadcast %61 : vector<1x128xf32> to vector<8x128xf32>
    %63 = arith.addf %60, %62 : vector<8x128xf32>
    %cst_32 = arith.constant 5.000000e-01 : f32
    %64 = vector.broadcast %cst_32 : f32 to vector<8x128xf32>
    %65 = arith.mulf %64, %63 : vector<8x128xf32>
    %66 = math.tanh %65 : vector<8x128xf32>
    %cst_33 = arith.constant 5.000000e-01 : f32
    %67 = vector.broadcast %cst_33 : f32 to vector<8x128xf32>
    %68 = arith.mulf %67, %66 : vector<8x128xf32>
    %cst_34 = arith.constant 5.000000e-01 : f32
    %69 = vector.broadcast %cst_34 : f32 to vector<8x128xf32>
    %70 = arith.addf %68, %69 : vector<8x128xf32>
    %cst_35 = arith.constant dense<0.000000e+00> : vector<128xf32>
    %71 = vector.multi_reduction <add>, %70, %cst_35 [0] : vector<8x128xf32> to vector<128xf32>
    %72 = vector.shape_cast %71 : vector<128xf32> to vector<1x128xf32>
    %cst_36 = arith.constant 8.000000e+00 : f32
    %73 = vector.broadcast %cst_36 : f32 to vector<1x128xf32>
    %74 = arith.divf %72, %73 : vector<1x128xf32>
    %75 = vector.broadcast %74 : vector<1x128xf32> to vector<8x128xf32>
    %76 = arith.subf %70, %75 : vector<8x128xf32>
    %77 = arith.mulf %76, %76 : vector<8x128xf32>
    %cst_37 = arith.constant dense<0.000000e+00> : vector<128xf32>
    %78 = vector.multi_reduction <add>, %77, %cst_37 [0] : vector<8x128xf32> to vector<128xf32>
    %79 = vector.shape_cast %78 : vector<128xf32> to vector<1x128xf32>
    %cst_38 = arith.constant 8.000000e+00 : f32
    %80 = vector.broadcast %cst_38 : f32 to vector<1x128xf32>
    %81 = arith.divf %79, %80 : vector<1x128xf32>
    %cst_39 = arith.constant 9.99999974E-6 : f32
    %82 = vector.broadcast %cst_39 : f32 to vector<1x128xf32>
    %83 = arith.addf %81, %82 : vector<1x128xf32>
    %84 = math.rsqrt %83 : vector<1x128xf32>
    %85 = vector.broadcast %84 : vector<1x128xf32> to vector<8x128xf32>
    %86 = arith.mulf %76, %85 : vector<8x128xf32>
    %87 = vector.extract_strided_slice %86 {offsets = [0, 0], sizes = [8, 16], strides = [1, 1]} : vector<8x128xf32> to vector<8x16xf32>
    %c0_40 = arith.constant 0 : index
    %c0_41 = arith.constant 0 : index
    %88 = vector.load %arg7[%c0_40, %c0_41] : memref<8x16xf32, #tpu.memory_space<vmem>>, vector<8x16xf32>
    tpu.vector_store %arg7[%c0_40, %c0_41], %87 {strides = array<i32>} : memref<8x16xf32, #tpu.memory_space<vmem>>, vector<8x16xf32>,
    return
  }
}

</mosaic_0001>

<bundles_post_ra>
// kernel: mlp_net_forward.1
= control target key start
LH: loop header
LB: loop body
LE: loop exit
PB: predicated region body
PF: predicated region fallthrough
CT: control target
= control target key end

     0   :  { %12 = vsyncpa [#allocation3], 0  ;;  %s876_s0 = inlined_call_operand.hbm [shape: f32[8,32], index: 0, kind: input, shape index: {}]   ;;  %s877_s1 = inlined_call_operand.hbm [shape: f32[128,128], index: 1, kind: input, shape index: {}]   ;;  %s878_s2 = inlined_call_operand.vmem [shape: f32[1,128], index: 2, kind: input, shape index: {}]   ;;  %s879_s3 = inlined_call_operand.hbm [shape: f32[128,128], index: 3, kind: input, shape index: {}]   ;;  %s880_s4 = inlined_call_operand.vmem [shape: f32[1,128], index: 4, kind: input, shape index: {}]   ;;  %s881_s5 = inlined_call_operand.hbm [shape: f32[128,128], index: 5, kind: input, shape index: {}]   ;;  %s882_s6 = inlined_call_operand.vmem [shape: f32[1,128], index: 6, kind: input, shape index: {}]   ;;  %s883_s7 = inlined_call_operand.hbm [shape: f32[8,16], index: 7, kind: output, shape index: {}]  }
   0x1   :  { %13 = vsyncpa [#allocation6], 0 }
   0x2   :  { %14 = vsyncpa [#allocation9], 0 }
   0x3   :  { %15 = vsyncpa [#allocation4], 0  ;;  %s740_s24 = smov [#allocation5]  }
   0x4   :  { %s31_s25 = sshll.u32 %s740_s24, 4  ;;  %s32_s25 = int_to_ptr.vmem [resolvable:$true] %s31_s25 }
   0x5   :  { %s640_s26 = scalar_lea.vmem %s32_s25, 2048  ;;  %p645_p1 = scmp.lt.s32.totalorder %s32_s25, %s32_s25 }
   0x6   :  { %p641_p0 = scmp.ne.s32.totalorder %s32_s25, %s640_s26  ;;  %p646_p2 = scmp.lt.s32.totalorder %s640_s26, %s640_s26 }
   0x8   :  { %p647_p3 = por %p646_p2, %p645_p1 }
   0xa   :  { %p648_p4 = pnand %p647_p3, %p641_p0 }
   0xc   :  { %651 = shalt.err (!%p648_p4)
}
   0xd   :  { %s741_s27 = smov 128   ;;  %s742_s28 = smov 8  }
   0xe   :  { %37 = dma.hbm_to_vmem [thread:$0]  %s877_s1, 2048, %s32_s25, [#allocation6], %s741_s27, %s741_s27, %s742_s28  }
   0xf   :  { %s743_s8 = smov [#allocation2]   ;;  %s744_s10 = smov [#allocation7]  }
  0x10   :  { %s22_s9 = sshll.u32 %s743_s8, 4  ;;  %s45_s11 = sshll.u32 %s744_s10, 4  ;;  %s23_s9 = int_to_ptr.vmem [resolvable:$true] %s22_s9  ;;  %s46_s11 = int_to_ptr.vmem [resolvable:$true] %s45_s11 }
  0x11   :  { %s660_s12 = scalar_lea.vmem %s23_s9, 128  ;;  %p665_p6 = scmp.lt.s32.totalorder %s23_s9, %s23_s9 }
  0x12   :  { %p661_p5 = scmp.ne.s32.totalorder %s23_s9, %s660_s12  ;;  %p666_p7 = scmp.lt.s32.totalorder %s660_s12, %s660_s12 }
  0x14   :  { %p667_p8 = por %p666_p7, %p665_p6 }
  0x16   :  { %p668_p9 = pnand %p667_p8, %p661_p5 }
  0x18   :  { %671 = shalt.err (!%p668_p9)
}
  0x19   :  { %25 = dma.hbm_to_vmem [thread:$0]  %s876_s0, 128, %s23_s9, [#allocation3]  }
  0x1a   :  { %s680_s15 = scalar_lea.vmem %s46_s11, 2048  ;;  %p685_p11 = scmp.lt.s32.totalorder %s46_s11, %s46_s11 }
  0x1b   :  { %p681_p10 = scmp.ne.s32.totalorder %s46_s11, %s680_s15  ;;  %p686_p12 = scmp.lt.s32.totalorder %s680_s15, %s680_s15 }
  0x1d   :  { %p687_p13 = por %p686_p12, %p685_p11 }
  0x1f   :  { %p688_p0 = pnand %p687_p13, %p681_p10 }
  0x21   :  { %691 = shalt.err (!%p688_p0)
}
  0x22   :  { %51 = dma.hbm_to_vmem [thread:$0]  %s879_s3, 2048, %s46_s11, [#allocation6], %s741_s27, %s741_s27, %s742_s28  }
  0x23   :  { %s745_s17 = smov [#allocation8]  }
  0x24   :  { %s59_s18 = sshll.u32 %s745_s17, 4  ;;  %s60_s18 = int_to_ptr.vmem [resolvable:$true] %s59_s18 }
  0x25   :  { %s700_s19 = scalar_lea.vmem %s60_s18, 2048  ;;  %p705_p2 = scmp.lt.s32.totalorder %s60_s18, %s60_s18 }
  0x26   :  { %p701_p1 = scmp.ne.s32.totalorder %s60_s18, %s700_s19  ;;  %p706_p3 = scmp.lt.s32.totalorder %s700_s19, %s700_s19 }
  0x28   :  { %p707_p4 = por %p706_p3, %p705_p2 }
  0x2a   :  { %p708_p5 = pnand %p707_p4, %p701_p1 }
  0x2c   :  { %711 = shalt.err (!%p708_p5)
}
  0x2d   :  { %65 = dma.hbm_to_vmem [thread:$0]  %s881_s5, 2048, %s60_s18, [#allocation9], %s741_s27, %s741_s27, %s742_s28  }
  0x2e   :  { %732 = dma.done.wait [#allocation3], 128  }
  0x2f   :  { %733 = vsyncadd [#allocation3], 4294967168 }
  0x30   :  { %734 = dma.done.wait [#allocation6], 4096  }
  0x31   :  { %735 = vsyncadd [#allocation6], 4294963200 }
  0x32   :  { %736 = dma.done.wait [#allocation9], 2048  }
  0x33   :  { %737 = vsyncadd [#allocation9], 4294965248  ;;  %v746_v0 = vmov 0.0   ;;  %vm747_vm0 = vmmov 0   ;;  %v98_v1 = vld [vmem:[#allocation5 + $0x78] sm:$0xff]  ;;  %v97_v2 = vld [vmem:[#allocation5 + $0x70] sm:$0xff] }
  0x34   :  { %506 = vmatprep.subr.mxu0 %v746_v0  ;;  %538 = vmatprep.mubr.msk.f32.mxu0 %vm747_vm0, %v746_v0  ;;  %v96_v3 = vld [vmem:[#allocation5 + $0x68] sm:$0xff]  ;;  %v95_v4 = vld [vmem:[#allocation5 + $0x60] sm:$0xff]  ;;  %v94_v5 = vld [vmem:[#allocation5 + $0x58] sm:$0xff]  ;;  %vm81_vm1 = vcmask 261120   ;;  %vm432_vm2 = vcmask 130048  }
  0x35   :  { %541 = vmatprep.subr.mxu1 %v746_v0  ;;  %573 = vmatprep.mubr.msk.f32.mxu1 %vm747_vm0, %v746_v0  ;;  %v93_v6 = vld [vmem:[#allocation5 + $0x50] sm:$0xff]  ;;  %v92_v7 = vld [vmem:[#allocation5 + $0x48] sm:$0xff]  ;;  %v91_v8 = vld [vmem:[#allocation5 + $0x40] sm:$0xff] }
  0x36   :  { %507 = vmatpush3.msra.mxu0 %v98_v1  ;;  %v90_v9 = vld [vmem:[#allocation5 + $0x38] sm:$0xff]  ;;  %v89_v10 = vld [vmem:[#allocation5 + $0x30] sm:$0xff]  ;;  %v88_v11 = vld [vmem:[#allocation5 + $0x28] sm:$0xff] }
  0x37   :  { %508 = vmatprep.subr.mxu0 %v746_v0  ;;  %v87_v12 = vld [vmem:[#allocation5 + $0x20] sm:$0xff]  ;;  %v86_v13 = vld [vmem:[#allocation5 + $0x18] sm:$0xff]  ;;  %v85_v14 = vld [vmem:[#allocation5 + $0x10] sm:$0xff] }
  0x38   :  { %509 = vmatpush3.msra.mxu0 %v97_v2  ;;  %v84_v15 = vld [vmem:[#allocation5 + $0x8] sm:$0xff]  ;;  %v83_v16 = vld [vmem:[#allocation5] sm:$0xff]  ;;  %v80_v17 = vld [vmem:[#allocation2] sm:$0xff] }
  0x39   :  { %510 = vmatprep.subr.mxu0 %v746_v0  ;;  %v215_v18 = vld [vmem:[#allocation7 + $0x78] sm:$0xff]  ;;  %v214_v19 = vld [vmem:[#allocation7 + $0x70] sm:$0xff]  ;;  %v213_v20 = vld [vmem:[#allocation7 + $0x68] sm:$0xff] }
  0x3a   :  { %511 = vmatpush3.msra.mxu0 %v96_v3  ;;  %542 = vmatpush3.msra.mxu1 %v215_v18  ;;  %v212_v21 = vld [vmem:[#allocation7 + $0x60] sm:$0xff]  ;;  %v211_v22 = vld [vmem:[#allocation7 + $0x58] sm:$0xff]  ;;  %v210_v23 = vld [vmem:[#allocation7 + $0x50] sm:$0xff] }
  0x3b   :  { %512 = vmatprep.subr.mxu0 %v746_v0  ;;  %543 = vmatprep.subr.mxu1 %v746_v0  ;;  %v209_v24 = vld [vmem:[#allocation7 + $0x48] sm:$0xff]  ;;  %v208_v25 = vld [vmem:[#allocation7 + $0x40] sm:$0xff]  ;;  %v207_v26 = vld [vmem:[#allocation7 + $0x38] sm:$0xff] }
  0x3c   :  { %513 = vmatpush3.msra.mxu0 %v95_v4  ;;  %544 = vmatpush3.msra.mxu1 %v214_v19  ;;  %v206_v27 = vld [vmem:[#allocation7 + $0x30] sm:$0xff]  ;;  %v205_v28 = vld [vmem:[#allocation7 + $0x28] sm:$0xff]  ;;  %v204_v29 = vld [vmem:[#allocation7 + $0x20] sm:$0xff] }
  0x3d   :  { %514 = vmatprep.subr.mxu0 %v746_v0  ;;  %545 = vmatprep.subr.mxu1 %v746_v0  ;;  %v203_v30 = vld [vmem:[#allocation7 + $0x18] sm:$0xff]  ;;  %v202_v31 = vld [vmem:[#allocation7 + $0x10] sm:$0xff]  ;;  %v201_v32 = vld [vmem:[#allocation7 + $0x8] sm:$0xff] }
  0x3e   :  { %515 = vmatpush3.msra.mxu0 %v94_v5  ;;  %546 = vmatpush3.msra.mxu1 %v213_v20  ;;  %v200_v33 = vld [vmem:[#allocation7] sm:$0xff]  ;;  %v451_v34 = vld [vmem:[%s878_s2] ss:$0 sm:$0xff]  ;;  %v330_v62 = vld [vmem:[#allocation8 + $0x70] sm:$0xff] }
  0x3f   :  { %516 = vmatprep.subr.mxu0 %v746_v0  ;;  %547 = vmatprep.subr.mxu1 %v746_v0  ;;  %v331_v61 = vld [vmem:[#allocation8 + $0x78] sm:$0xff]  ;;  %v329_v63 = vld [vmem:[#allocation8 + $0x68] sm:$0xff]  ;;  %v328_v1 = vld [vmem:[#allocation8 + $0x60] sm:$0xff] }
  0x40   :  { %517 = vmatpush3.msra.mxu0 %v93_v6  ;;  %548 = vmatpush3.msra.mxu1 %v212_v21  ;;  %v327_v2 = vld [vmem:[#allocation8 + $0x58] sm:$0xff]  ;;  %v326_v3 = vld [vmem:[#allocation8 + $0x50] sm:$0xff]  ;;  %v325_v4 = vld [vmem:[#allocation8 + $0x48] sm:$0xff] }
  0x41   :  { %518 = vmatprep.subr.mxu0 %v746_v0  ;;  %549 = vmatprep.subr.mxu1 %v746_v0  ;;  %v324_v5 = vld [vmem:[#allocation8 + $0x40] sm:$0xff]  ;;  %v323_v6 = vld [vmem:[#allocation8 + $0x38] sm:$0xff] }
  0x42   :  { %519 = vmatpush3.msra.mxu0 %v92_v7  ;;  %550 = vmatpush3.msra.mxu1 %v211_v22  ;;  %v322_v7 = vld [vmem:[#allocation8 + $0x30] sm:$0xff] }
  0x43   :  { %520 = vmatprep.subr.mxu0 %v746_v0  ;;  %551 = vmatprep.subr.mxu1 %v746_v0 }
  0x44   :  { %521 = vmatpush3.msra.mxu0 %v91_v8  ;;  %552 = vmatpush3.msra.mxu1 %v210_v23  ;;  %v321_v8 = vld [vmem:[#allocation8 + $0x28] sm:$0xff] }
  0x45   :  { %522 = vmatprep.subr.mxu0 %v746_v0  ;;  %553 = vmatprep.subr.mxu1 %v746_v0 }
  0x46   :  { %523 = vmatpush3.msra.mxu0 %v90_v9  ;;  %554 = vmatpush3.msra.mxu1 %v209_v24  ;;  %v320_v9 = vld [vmem:[#allocation8 + $0x20] sm:$0xff] }
  0x47   :  { %524 = vmatprep.subr.mxu0 %v746_v0  ;;  %555 = vmatprep.subr.mxu1 %v746_v0 }
  0x48   :  { %525 = vmatpush3.msra.mxu0 %v89_v10  ;;  %556 = vmatpush3.msra.mxu1 %v208_v25  ;;  %v319_v10 = vld [vmem:[#allocation8 + $0x18] sm:$0xff] }
  0x49   :  { %526 = vmatprep.subr.mxu0 %v746_v0  ;;  %557 = vmatprep.subr.mxu1 %v746_v0 }
  0x4a   :  { %527 = vmatpush3.msra.mxu0 %v88_v11  ;;  %558 = vmatpush3.msra.mxu1 %v207_v26  ;;  %v318_v11 = vld [vmem:[#allocation8 + $0x10] sm:$0xff] }
  0x4b   :  { %528 = vmatprep.subr.mxu0 %v746_v0  ;;  %559 = vmatprep.subr.mxu1 %v746_v0 }
  0x4c   :  { %529 = vmatpush3.msra.mxu0 %v87_v12  ;;  %560 = vmatpush3.msra.mxu1 %v206_v27  ;;  %v317_v12 = vld [vmem:[#allocation8 + $0x8] sm:$0xff] }
  0x4d   :  { %530 = vmatprep.subr.mxu0 %v746_v0  ;;  %561 = vmatprep.subr.mxu1 %v746_v0 }
  0x4e   :  { %531 = vmatpush3.msra.mxu0 %v86_v13  ;;  %562 = vmatpush3.msra.mxu1 %v205_v28  ;;  %v316_v13 = vld [vmem:[#allocation8] sm:$0xff] }
  0x4f   :  { %532 = vmatprep.subr.mxu0 %v746_v0  ;;  %563 = vmatprep.subr.mxu1 %v746_v0 }
  0x50   :  { %533 = vmatpush3.msra.mxu0 %v85_v14  ;;  %564 = vmatpush3.msra.mxu1 %v204_v29  ;;  %v453_v14 = vld [vmem:[%s880_s4] ss:$0 sm:$0xff] }
  0x51   :  { %534 = vmatprep.subr.mxu0 %v746_v0  ;;  %565 = vmatprep.subr.mxu1 %v746_v0 }
  0x52   :  { %535 = vmatpush3.msra.mxu0 %v84_v15  ;;  %566 = vmatpush3.msra.mxu1 %v203_v30 }
  0x53   :  { %536 = vmatprep.subr.mxu0 %v746_v0  ;;  %567 = vmatprep.subr.mxu1 %v746_v0 }
  0x54   :  { %537 = vmatpush3.msra.mxu0 %v83_v16  ;;  %568 = vmatpush3.msra.mxu1 %v202_v31 }
  0x55   :  { %539 = vmatmul.mubr.msk.f32.vlgmr.msra.gmra.mxu0 %vm81_vm1, %v80_v17  ;;  %576 = vmatprep.subr.mxu0 %v746_v0 }
  0x56   :  { %608 = vmatprep.mubr.msk.f32.mxu0 %vm747_vm0, %v746_v0  ;;  %569 = vmatprep.subr.mxu1 %v746_v0 }
  0x57   :  { %570 = vmatpush3.msra.mxu1 %v201_v32  ;;  %577 = vmatpush3.msra.mxu0 %v331_v61 }
  0x58   :  { %571 = vmatprep.subr.mxu1 %v746_v0  ;;  %578 = vmatprep.subr.mxu0 %v746_v0 }
  0x59   :  { %572 = vmatpush3.msra.mxu1 %v200_v33  ;;  %579 = vmatpush3.msra.mxu0 %v330_v62 }
  0x5a   :  { %580 = vmatprep.subr.mxu0 %v746_v0 }
  0x5b   :  { %581 = vmatpush3.msra.mxu0 %v329_v63 }
  0x5c   :  { %582 = vmatprep.subr.mxu0 %v746_v0 }
  0x5d   :  { %583 = vmatpush3.msra.mxu0 %v328_v1 }
  0x5e   :  { %584 = vmatprep.subr.mxu0 %v746_v0 }
  0x5f   :  { %585 = vmatpush3.msra.mxu0 %v327_v2 }
  0x60   :  { %586 = vmatprep.subr.mxu0 %v746_v0 }
  0x61   :  { %587 = vmatpush3.msra.mxu0 %v326_v3 }
  0x62   :  { %588 = vmatprep.subr.mxu0 %v746_v0 }
  0x63   :  { %589 = vmatpush3.msra.mxu0 %v325_v4 }
  0x64   :  { %590 = vmatprep.subr.mxu0 %v746_v0 }
  0x65   :  { %591 = vmatpush3.msra.mxu0 %v324_v5 }
  0x66   :  { %592 = vmatprep.subr.mxu0 %v746_v0 }
  0x67   :  { %593 = vmatpush3.msra.mxu0 %v323_v6 }
  0x68   :  { %594 = vmatprep.subr.mxu0 %v746_v0 }
  0x69   :  { %595 = vmatpush3.msra.mxu0 %v322_v7 }
  0x6a   :  { %596 = vmatprep.subr.mxu0 %v746_v0 }
  0x6b   :  { %597 = vmatpush3.msra.mxu0 %v321_v8 }
  0x6c   :  { %598 = vmatprep.subr.mxu0 %v746_v0 }
  0x6d   :  { %599 = vmatpush3.msra.mxu0 %v320_v9 }
  0x6e   :  { %600 = vmatprep.subr.mxu0 %v746_v0 }
  0x6f   :  { %601 = vmatpush3.msra.mxu0 %v319_v10 }
  0x70   :  { %602 = vmatprep.subr.mxu0 %v746_v0 }
  0x71   :  { %603 = vmatpush3.msra.mxu0 %v318_v11 }
  0x72   :  { %604 = vmatprep.subr.mxu0 %v746_v0 }
  0x73   :  { %605 = vmatpush3.msra.mxu0 %v317_v12 }
  0x74   :  { %606 = vmatprep.subr.mxu0 %v746_v0 }
  0x75   :  { %607 = vmatpush3.msra.mxu0 %v316_v13 }
 0x115   :  { %v172_v35 = vpop.f32.mrf.mxu0 }
 0x116   :  { %v173_v36 = vadd.f32 %v451_v34, %v172_v35 }
 0x117   :  { %v540_v37 = vpop.f32.mrf.mxu0 }
 0x118   :  { %v176_v38 = vmul.f32 0.5, %v173_v36 }
 0x11a   :  { %620 = vtanh.f32 %v176_v38 }
 0x127   :  { %v621_v39 = vpop.eup %620 }
 0x128   :  { %v178_v40 = vmul.f32 0.5, %v621_v39 }
 0x12a   :  { %v179_v41 = vadd.f32 0.5, %v178_v40  ;;  %v454_v40 = vld [vmem:[%s882_s6] ss:$0 sm:$0xff]  ;;  %s748_s6 = smov [#allocation10]  }
 0x12b   :  { %s440_s23 = sshll.u32 %s748_s6, 4  ;;  %s441_s23 = int_to_ptr.vmem [resolvable:$true] %s440_s23 }
 0x12c   :  { %v180_v42 = vrot.slane %v179_v41, 4  ;;  %s712_s24 = scalar_lea.vmem %s441_s23, 128  ;;  %p717_p7 = scmp.lt.s32.totalorder %s441_s23, %s441_s23 }
 0x12d   :  { %p713_p6 = scmp.ne.s32.totalorder %s441_s23, %s712_s24  ;;  %p718_p8 = scmp.lt.s32.totalorder %s712_s24, %s712_s24 }
 0x12e   :  { %v181_v43 = vadd.f32 %v180_v42, %v179_v41 }
 0x12f   :  { %p719_p9 = por %p718_p8, %p717_p7 }
 0x130   :  { %v182_v44 = vrot.slane %v181_v43, 2 }
 0x131   :  { %p720_p10 = pnand %p719_p9, %p713_p6 }
 0x132   :  { %v183_v45 = vadd.f32 %v182_v44, %v181_v43 }
 0x134   :  { %v184_v46 = vrot.slane %v183_v45, 1 }
 0x136   :  { %v185_v47 = vadd.f32 %v184_v46, %v183_v45 }
 0x138   :  { %v187_v48 = vmul.f32 0.125, %v185_v47 }
 0x13a   :  { %v188_v49 = vsub.f32 %v179_v41, %v187_v48 }
 0x13c   :  { %v189_v50 = vmul.f32 %v188_v49, %v188_v49 }
 0x13e   :  { %v190_v51 = vrot.slane %v189_v50, 4 }
 0x140   :  { %v191_v52 = vadd.f32 %v190_v51, %v189_v50 }
 0x142   :  { %v192_v53 = vrot.slane %v191_v52, 2 }
 0x144   :  { %v193_v54 = vadd.f32 %v192_v53, %v191_v52 }
 0x146   :  { %v194_v55 = vrot.slane %v193_v54, 1 }
 0x148   :  { %v195_v56 = vadd.f32 %v194_v55, %v193_v54 }
 0x14a   :  { %v196_v57 = vmul.f32 0.125, %v195_v56 }
 0x14c   :  { %v197_v58 = vadd.f32 1e-05, %v196_v57 }
 0x14e   :  { %622 = vrsqrt.f32 %v197_v58 }
 0x15b   :  { %v623_v59 = vpop.eup %622 }
 0x15c   :  { %v199_v60 = vmul.f32 %v623_v59, %v188_v49 }
 0x15e   :  { %574 = vmatmul.mubr.f32.vlgmr.msra.gmra.mxu1 %v199_v60 }
 0x21e   :  { %v289_v15 = vpop.f32.mrf.mxu1 }
 0x21f   :  { %v290_v16 = vadd.f32 %v453_v14, %v289_v15 }
 0x220   :  { %v575_v17 = vpop.f32.mrf.mxu1 }
 0x221   :  { %v293_v18 = vmul.f32 0.5, %v290_v16 }
 0x223   :  { %624 = vtanh.f32 %v293_v18 }
 0x230   :  { %v625_v19 = vpop.eup %624 }
 0x231   :  { %v295_v20 = vmul.f32 0.5, %v625_v19 }
 0x233   :  { %v296_v21 = vadd.f32 0.5, %v295_v20 }
 0x235   :  { %v297_v22 = vrot.slane %v296_v21, 4 }
 0x237   :  { %v298_v23 = vadd.f32 %v297_v22, %v296_v21 }
 0x239   :  { %v299_v24 = vrot.slane %v298_v23, 2 }
 0x23b   :  { %v300_v25 = vadd.f32 %v299_v24, %v298_v23 }
 0x23d   :  { %v301_v26 = vrot.slane %v300_v25, 1 }
 0x23f   :  { %v302_v27 = vadd.f32 %v301_v26, %v300_v25 }
 0x241   :  { %v303_v0 = vmul.f32 0.125, %v302_v27 }
 0x243   :  { %v304_v28 = vsub.f32 %v296_v21, %v303_v0 }
 0x245   :  { %v305_v29 = vmul.f32 %v304_v28, %v304_v28 }
 0x247   :  { %v306_v30 = vrot.slane %v305_v29, 4 }
 0x249   :  { %v307_v31 = vadd.f32 %v306_v30, %v305_v29 }
 0x24b   :  { %v308_v32 = vrot.slane %v307_v31, 2 }
 0x24d   :  { %v309_v33 = vadd.f32 %v308_v32, %v307_v31 }
 0x24f   :  { %v310_v34 = vrot.slane %v309_v33, 1 }
 0x251   :  { %v311_v35 = vadd.f32 %v310_v34, %v309_v33 }
 0x253   :  { %v312_v36 = vmul.f32 0.125, %v311_v35 }
 0x255   :  { %v313_v37 = vadd.f32 1e-05, %v312_v36 }
 0x257   :  { %626 = vrsqrt.f32 %v313_v37 }
 0x264   :  { %v627_v38 = vpop.eup %626 }
 0x265   :  { %v315_v39 = vmul.f32 %v627_v38, %v304_v28 }
 0x267   :  { %609 = vmatmul.mubr.f32.vlgmr.msra.gmra.mxu0 %v315_v39 }
 0x327   :  { %v405_v41 = vpop.f32.mrf.mxu0 }
 0x328   :  { %v406_v42 = vadd.f32 %v454_v40, %v405_v41 }
 0x329   :  { %v610_v43 = vpop.f32.mrf.mxu0 }
 0x32a   :  { %v409_v44 = vmul.f32 0.5, %v406_v42 }
 0x32c   :  { %628 = vtanh.f32 %v409_v44 }
 0x339   :  { %v629_v45 = vpop.eup %628 }
 0x33a   :  { %v411_v46 = vmul.f32 0.5, %v629_v45 }
 0x33c   :  { %v412_v47 = vadd.f32 0.5, %v411_v46 }
 0x33e   :  { %v413_v48 = vrot.slane %v412_v47, 4 }
 0x340   :  { %v414_v49 = vadd.f32 %v413_v48, %v412_v47 }
 0x342   :  { %v415_v50 = vrot.slane %v414_v49, 2 }
 0x344   :  { %v416_v51 = vadd.f32 %v415_v50, %v414_v49 }
 0x346   :  { %v417_v52 = vrot.slane %v416_v51, 1 }
 0x348   :  { %v418_v53 = vadd.f32 %v417_v52, %v416_v51 }
 0x34a   :  { %v419_v54 = vmul.f32 0.125, %v418_v53 }
 0x34c   :  { %v420_v55 = vsub.f32 %v412_v47, %v419_v54 }
 0x34e   :  { %v421_v56 = vmul.f32 %v420_v55, %v420_v55 }
 0x350   :  { %v422_v57 = vrot.slane %v421_v56, 4 }
 0x352   :  { %v423_v58 = vadd.f32 %v422_v57, %v421_v56 }
 0x354   :  { %v424_v59 = vrot.slane %v423_v58, 2 }
 0x356   :  { %v425_v60 = vadd.f32 %v424_v59, %v423_v58 }
 0x358   :  { %v426_v61 = vrot.slane %v425_v60, 1 }
 0x35a   :  { %v427_v62 = vadd.f32 %v426_v61, %v425_v60 }
 0x35c   :  { %v428_v63 = vmul.f32 0.125, %v427_v62 }
 0x35e   :  { %v429_v1 = vadd.f32 1e-05, %v428_v63 }
 0x360   :  { %630 = vrsqrt.f32 %v429_v1 }
 0x36d   :  { %v631_v2 = vpop.eup %630 }
 0x36e   :  { %v431_v3 = vmul.f32 %v631_v2, %v420_v55 }
 0x370   :  { %433 = vst.msk [vmem:[#allocation10] sm:$0xff] %vm432_vm2, %v431_v3 }
 0x371   :  { %723 = shalt.err (!%p720_p10)
}
 0x372   :  { %443 = dma.vmem_to_hbm [thread:$0]  %s441_s23, 128, %s883_s7, [#allocation4]  }
 0x373   :  { %738 = dma.done.wait [#allocation4], 128  }
 0x374   :  { %739 = vsyncadd [#allocation4], 4294967168 }
 0x375   :  { %447 = vsyncpa [#allocation3], 1 }
 0x376   :  { %448 = vsyncpa [#allocation6], 1 }
 0x377   :  { %449 = vsyncpa [#allocation9], 1 }
 0x378   :  { %450 = vsyncpa [#allocation4], 1 }

</bundles_post_ra>
